<compile_context>
chip_gen: v7x
topology: tpu7x:2x2x1
jax: 0.10.0
libtpu: 0.0.40
codegen_flags: <defaults>
</compile_context>

<pallas_src>
import math

import jax
import jax.numpy as jnp
from jax.experimental import pallas as pl
from jax.experimental.pallas import tpu as pltpu


def _round_up(a, b):
    return ((a + b - 1) // b) * b


def _packing_factor(K, H):
    """Smallest g such that both g*K and g*H are multiples of the 128-lane width."""
    g = math.lcm(128 // math.gcd(K, 128), 128 // math.gcd(H, 128))
    # Keep the block-diagonal weight small; for awkward K/H fall back to no
    # packing (still correct, just lane-masked stores -- a perf cliff only).
    if g * max(K, H) > 1024:
        g = 1
    return g


def _tile_defaults():
    """(default tile_m in tokens, scoped-VMEM limit) for the local chip.

    Per-step VMEM is ~640 B/token for f32 I/O (double-buffered in/out tiles +
    the f32 intermediate y), so tile_m=32768 is ~20-30 MiB.
    """
    try:
        vmem_cap = int(pltpu.get_tpu_info().vmem_capacity_bytes)
    except Exception:
        vmem_cap = 64 << 20
    if vmem_cap >= (96 << 20):        # v5e / v6e: 128 MiB physical VMEM
        return 32768, 64 << 20
    return 32768, 40 << 20            # v7x: 64 MiB per TensorCore


def _point_embedding_kernel(x_ref, w_ref, o_ref):
    # x_ref: [tm_g, g*K]    g tokens packed per row  (128-lane-dense reads)
    # w_ref: [g*K, 2*g*H]   block-diag [W_gate | W_emb], VMEM-resident
    # o_ref: [tm_g, g*H]    g tokens' outputs per row (lane-dense stores)
    x = x_ref[...]
    y = jnp.dot(x, w_ref[...], preferred_element_type=jnp.float32)
    gh = y.shape[-1] // 2
    gate = y[:, :gh]            # split on a 128-lane boundary -> free
    emb = y[:, gh:]
    o_ref[...] = (gate * jax.nn.sigmoid(gate) * emb).astype(o_ref.dtype)


def pack_point_embedding_weights(w_gate, w_emb, g, dtype):
    """torch Linear layout [H, K] -> fused block-diagonal [g*K, 2*g*H]."""
    eye_g = jnp.eye(g, dtype=dtype)
    wg_blk = jnp.kron(eye_g, w_gate.T.astype(dtype))      # [g*K, g*H]
    we_blk = jnp.kron(eye_g, w_emb.T.astype(dtype))       # [g*K, g*H]
    return jnp.concatenate([wg_blk, we_blk], axis=1)       # [g*K, 2*g*H]


def timer_point_embedding(x, w_gate, w_emb, *, tile_m=None, io_dtype=None):
    """emb = silu(x @ w_gate.T) * (x @ w_emb.T)

    x: [B, S, K]; w_gate, w_emb: [H, K] (torch nn.Linear layout). Returns [B, S, H].
    io_dtype: optional narrower HBM dtype (e.g. jnp.bfloat16); accumulate/SiLU
    stay f32 in-kernel.
    """
    B, S, K = x.shape
    H, K2 = w_gate.shape
    assert K2 == K and w_emb.shape == (H, K)
    M = B * S

    compute_dtype = jnp.dtype(io_dtype) if io_dtype is not None else jnp.dtype(x.dtype)
    out_dtype = compute_dtype

    g = _packing_factor(K, H)

    default_tile_m, vmem_limit = _tile_defaults()
    if tile_m is None:
        tile_m = default_tile_m

    # Pad M only up to the row alignment (16 packed rows -> <= 16*g-1 = 127
    # zero rows), never to a full tile; SiLU(0)*0 = 0 so padding is benign.
    row_align = 16 * g                       # 16 sublanes covers f32 and bf16 tiling
    M_pad = _round_up(M, row_align)

    tile_m = max(row_align, (min(tile_m, M_pad) // row_align) * row_align)
    # Give the megacore (v7x) at least 2 grid steps when there is enough work.
    if M_pad >= 2 * row_align:
        half = _round_up((M_pad + 1) // 2, row_align)
        tile_m = min(tile_m, half)

    x2 = x.reshape(M, K).astype(compute_dtype)
    if M_pad != M:
        x2 = jnp.pad(x2, ((0, M_pad - M), (0, 0)))
    xg = x2.reshape(M_pad // g, g * K)                     # free row-major reshape

    w_cat = pack_point_embedding_weights(w_gate, w_emb, g, compute_dtype)

    Mg = M_pad // g
    tm_g = tile_m // g
    grid = (pl.cdiv(Mg, tm_g),)                            # ragged last tile is masked

    in_itemsize = jnp.dtype(compute_dtype).itemsize
    out_itemsize = jnp.dtype(out_dtype).itemsize
    cost = pl.CostEstimate(
        flops=4 * M * K * H,                 # two bias-free matmuls per token
        transcendentals=M * H,               # sigmoid
        bytes_accessed=(xg.size + w_cat.size) * in_itemsize + Mg * g * H * out_itemsize,
    )

    out = pl.pallas_call(
        _point_embedding_kernel,
        out_shape=jax.ShapeDtypeStruct((Mg, g * H), out_dtype),
        grid_spec=pltpu.PrefetchScalarGridSpec(
            num_scalar_prefetch=0,
            grid=grid,
            in_specs=[
                pl.BlockSpec((tm_g, g * K), lambda i: (i, 0)),
                # Weight block index is constant -> stays VMEM-resident across steps.
                pl.BlockSpec((g * K, 2 * g * H), lambda i: (0, 0)),
            ],
            out_specs=pl.BlockSpec((tm_g, g * H), lambda i: (i, 0)),
        ),
        compiler_params=pltpu.CompilerParams(
            dimension_semantics=("parallel",),
            vmem_limit_bytes=vmem_limit,
        ),
        cost_estimate=cost,
    )(xg, w_cat)

    out = out.reshape(M_pad, H)[:M]                        # free reshape + slice
    return out.reshape(B, S, H)


def _reference(x, w_gate, w_emb):
    gate = jnp.einsum("bsk,hk->bsh", x, w_gate)
    emb = jnp.einsum("bsk,hk->bsh", x, w_emb)
    return jax.nn.silu(gate) * emb


if __name__ == "__main__":
    # Shapes consistent with the module: input_token_len=16, hidden_size=32.
    batch, seq, input_token_len, hidden_size = 2, 8, 16, 32

    key = jax.random.PRNGKey(0)
    kx, kg, ke = jax.random.split(key, 3)

    x = jax.random.normal(kx, (batch, seq, input_token_len), dtype=jnp.float32)
    # torch Linear weight layout: [out_features, in_features].
    w_gate = jax.random.normal(kg, (hidden_size, input_token_len), dtype=jnp.float32) * 0.1
    w_emb = jax.random.normal(ke, (hidden_size, input_token_len), dtype=jnp.float32) * 0.1

    fn = jax.jit(timer_point_embedding, static_argnames=("tile_m", "io_dtype"))

    out = jax.block_until_ready(fn(x, w_gate, w_emb))
    ref = _reference(x, w_gate, w_emb)
    assert out.shape == (batch, seq, hidden_size)
    assert jnp.allclose(out, ref, atol=1e-5, rtol=1e-5)

    # Ragged / non-divisible-M path (pads only to the small row alignment, and
    # exercises a multi-tile "parallel" grid).
    x2 = jax.random.normal(kx, (3, 50, input_token_len), dtype=jnp.float32)
    out2 = jax.block_until_ready(fn(x2, w_gate, w_emb))
    assert out2.shape == (3, 50, hidden_size)
    assert jnp.allclose(out2, _reference(x2, w_gate, w_emb), atol=1e-5, rtol=1e-5)

    # Optional bf16 I/O path (~2x HBM-bandwidth lever); f32 accumulate + SiLU in-kernel.
    out_bf16 = jax.block_until_ready(fn(x, w_gate, w_emb, io_dtype=jnp.bfloat16))
    assert out_bf16.shape == (batch, seq, hidden_size)
    assert out_bf16.dtype == jnp.bfloat16
    assert jnp.allclose(out_bf16.astype(jnp.float32), ref, atol=6e-2, rtol=6e-2)

    print("KERNEL_OK")
</pallas_src>

<mosaic_0001>
module attributes {stable_mosaic.version = 11 : i64} {
  func.func @_point_embedding_kernel(%arg0: i32, %arg1: memref<16x128xf32, #tpu.memory_space<vmem>>, %arg2: memref<128x512xf32, #tpu.memory_space<vmem>>, %arg3: memref<16x256xf32, #tpu.memory_space<vmem>>) attributes {dimension_semantics = [#tpu.dimension_semantics<parallel>], iteration_bounds = array<i64: 1>, scalar_prefetch = 0 : i64, scratch_operands = 0 : i64, tpu.core_type = #tpu.core_type<tc>, window_params = [{transform_indices = @transform_0, window_bounds = array<i64: 16, 128>}, {pipeline_mode = #tpu.pipeline_mode<synchronous>, transform_indices = @transform_1, window_bounds = array<i64: 128, 512>}, {transform_indices = @transform_2, window_bounds = array<i64: 16, 256>}]} {
    %c0 = arith.constant 0 : index
    %c0_0 = arith.constant 0 : index
    %0 = vector.load %arg1[%c0, %c0_0] : memref<16x128xf32, #tpu.memory_space<vmem>>, vector<16x128xf32>
    %c0_1 = arith.constant 0 : index
    %c0_2 = arith.constant 0 : index
    %1 = vector.load %arg2[%c0_1, %c0_2] : memref<128x512xf32, #tpu.memory_space<vmem>>, vector<128x512xf32>
    %cst = arith.constant dense<0.000000e+00> : vector<16x512xf32>
    %2 = tpu.matmul %0, %1, %cst {dimension_numbers = #tpu.dot_dimension_numbers<[1], [0], [0], [1], [0, 0, 1, 1], [], []>} : vector<16x128xf32>, vector<128x512xf32>, vector<16x512xf32> -> vector<16x512xf32>
    %3 = vector.extract_strided_slice %2 {offsets = [0, 0], sizes = [16, 256], strides = [1, 1]} : vector<16x512xf32> to vector<16x256xf32>
    %4 = vector.extract_strided_slice %2 {offsets = [0, 256], sizes = [16, 256], strides = [1, 1]} : vector<16x512xf32> to vector<16x256xf32>
    %5 = arith.negf %3 : vector<16x256xf32>
    %6 = math.exp %5 : vector<16x256xf32>
    %cst_3 = arith.constant 1.000000e+00 : f32
    %7 = vector.broadcast %cst_3 : f32 to vector<16x256xf32>
    %8 = arith.addf %7, %6 : vector<16x256xf32>
    %9 = arith.divf %7, %8 : vector<16x256xf32>
    %10 = arith.mulf %3, %9 : vector<16x256xf32>
    %11 = arith.mulf %10, %4 : vector<16x256xf32>
    %c0_4 = arith.constant 0 : index
    %c0_5 = arith.constant 0 : index
    %12 = vector.load %arg3[%c0_4, %c0_5] : memref<16x256xf32, #tpu.memory_space<vmem>>, vector<16x256xf32>
    tpu.vector_store %arg3[%c0_4, %c0_5], %11 {strides = array<i32>} : memref<16x256xf32, #tpu.memory_space<vmem>>, vector<16x256xf32>,
    return
  }
  func.func @transform_0(%arg0: i32) -> (i32, i32) {
    %c0_i32 = arith.constant 0 : i32
    %c0_i32_0 = arith.constant 0 : i32
    return %arg0, %c0_i32 : i32, i32
  }
  func.func @transform_1(%arg0: i32) -> (i32, i32) {
    %c0_i32 = arith.constant 0 : i32
    %c0_i32_0 = arith.constant 0 : i32
    %c0_i32_1 = arith.constant 0 : i32
    return %c0_i32, %c0_i32_0 : i32, i32
  }
  func.func @transform_2(%arg0: i32) -> (i32, i32) {
    %c0_i32 = arith.constant 0 : i32
    %c0_i32_0 = arith.constant 0 : i32
    return %arg0, %c0_i32 : i32, i32
  }
}

</mosaic_0001>

<bundles_post_ra>
// kernel: timer_point_embedding.1
= control target key start
LH: loop header
LB: loop body
LE: loop exit
PB: predicated region body
PF: predicated region fallthrough
CT: control target
= control target key end

     0   :  { %v356_v3 = vmov 0.0   ;;  %s586_s1 = inlined_call_operand.vmem [shape: f32[128,512], index: 1, kind: input, shape index: {}]   ;;  %s587_s0 = inlined_call_operand.vmem [shape: f32[16,128], index: 0, kind: input, shape index: {}]   ;;  %s588_s2 = inlined_call_operand.vmem [shape: f32[16,256], index: 2, kind: output, shape index: {}]  }
   0x1   :  { %v14_v0 = vld [vmem:[%s586_s1 + $0x8] sm:$0xff]  ;;  %v13_v2 = vld [vmem:[%s586_s1] sm:$0xff]  ;;  %141 = vmatprep.mubr.f32.mxu0 %v356_v3  ;;  %218 = vmatprep.mubr.f32.mxu1 %v356_v3  ;;  %v16_v24 = vld [vmem:[%s586_s1 + $0x18] sm:$0xff] }
   0x2   :  { %v18_v1 = vld [vmem:[%s586_s1 + $0x28] sm:$0xff]  ;;  %v17_v5 = vld [vmem:[%s586_s1 + $0x20] sm:$0xff]  ;;  %v20_v25 = vld [vmem:[%s586_s1 + $0x38] sm:$0xff] }
   0x3   :  { %v275_v4 = vpack.c.bf16 %v18_v1, %v14_v0  ;;  %v22_v6 = vld [vmem:[%s586_s1 + $0x48] sm:$0xff]  ;;  %v277_v8 = vpack.c.bf16 %v17_v5, %v13_v2  ;;  %v21_v10 = vld [vmem:[%s586_s1 + $0x40] sm:$0xff]  ;;  %v307_v28 = vpack.c.bf16 %v20_v25, %v16_v24  ;;  %v15_v29 = vld [vmem:[%s586_s1 + $0x10] sm:$0xff] }
   0x4   :  { %v26_v7 = vld [vmem:[%s586_s1 + $0x68] sm:$0xff]  ;;  %v25_v11 = vld [vmem:[%s586_s1 + $0x60] sm:$0xff]  ;;  %v19_v31 = vld [vmem:[%s586_s1 + $0x30] sm:$0xff] }
   0x5   :  { %v279_v9 = vpack.c.bf16 %v26_v7, %v22_v6  ;;  %v30_v12 = vld [vmem:[%s586_s1 + $0x88] sm:$0xff]  ;;  %276 = vmatprep.subr.bf16.mxu0 %v275_v4  ;;  %v281_v14 = vpack.c.bf16 %v25_v11, %v21_v10  ;;  %v29_v16 = vld [vmem:[%s586_s1 + $0x80] sm:$0xff]  ;;  %308 = vmatprep.subr.bf16.mxu1 %v307_v28  ;;  %v309_v34 = vpack.c.bf16 %v19_v31, %v15_v29  ;;  %v24_v35 = vld [vmem:[%s586_s1 + $0x58] sm:$0xff] }
   0x6   :  { %v34_v13 = vld [vmem:[%s586_s1 + $0xa8] sm:$0xff]  ;;  %278 = vmatpush1.bf16.msra.mxu0 %v277_v8  ;;  %v33_v17 = vld [vmem:[%s586_s1 + $0xa0] sm:$0xff]  ;;  %v28_v36 = vld [vmem:[%s586_s1 + $0x78] sm:$0xff] }
   0x7   :  { %280 = vmatprep.subr.bf16.mxu0 %v279_v9  ;;  %v283_v15 = vpack.c.bf16 %v34_v13, %v30_v12  ;;  %v38_v18 = vld [vmem:[%s586_s1 + $0xc8] sm:$0xff]  ;;  %v285_v20 = vpack.c.bf16 %v33_v17, %v29_v16  ;;  %v37_v21 = vld [vmem:[%s586_s1 + $0xc0] sm:$0xff]  ;;  %v311_v38 = vpack.c.bf16 %v28_v36, %v24_v35  ;;  %v23_v39 = vld [vmem:[%s586_s1 + $0x50] sm:$0xff]  ;;  %310 = vmatpush1.bf16.msra.mxu1 %v309_v34 }
   0x8   :  { %v42_v19 = vld [vmem:[%s586_s1 + $0xe8] sm:$0xff]  ;;  %v41_v23 = vld [vmem:[%s586_s1 + $0xe0] sm:$0xff]  ;;  %v27_v40 = vld [vmem:[%s586_s1 + $0x70] sm:$0xff] }
   0x9   :  { %v287_v22 = vpack.c.bf16 %v42_v19, %v38_v18  ;;  %v46_v26 = vld [vmem:[%s586_s1 + $0x108] sm:$0xff]  ;;  %v45_v30 = vld [vmem:[%s586_s1 + $0x100] sm:$0xff]  ;;  %v289_v32 = vpack.c.bf16 %v41_v23, %v37_v21  ;;  %v32_v41 = vld [vmem:[%s586_s1 + $0x98] sm:$0xff]  ;;  %v313_v44 = vpack.c.bf16 %v27_v40, %v23_v39  ;;  %312 = vmatprep.subr.bf16.mxu1 %v311_v38 }
   0xa   :  { %282 = vmatpush1.bf16.msra.mxu0 %v281_v14  ;;  %v50_v27 = vld [vmem:[%s586_s1 + $0x128] sm:$0xff]  ;;  %v49_v33 = vld [vmem:[%s586_s1 + $0x120] sm:$0xff]  ;;  %v36_v45 = vld [vmem:[%s586_s1 + $0xb8] sm:$0xff] }
   0xb   :  { %284 = vmatprep.subr.bf16.mxu0 %v283_v15  ;;  %v291_v37 = vpack.c.bf16 %v50_v27, %v46_v26  ;;  %v54_v42 = vld [vmem:[%s586_s1 + $0x148] sm:$0xff]  ;;  %v315_v46 = vpack.c.bf16 %v36_v45, %v32_v41  ;;  %v31_v47 = vld [vmem:[%s586_s1 + $0x90] sm:$0xff]  ;;  %v293_v49 = vpack.c.bf16 %v49_v33, %v45_v30  ;;  %v40_v50 = vld [vmem:[%s586_s1 + $0xd8] sm:$0xff]  ;;  %314 = vmatpush1.bf16.msra.mxu1 %v313_v44 }
   0xc   :  { %v58_v43 = vld [vmem:[%s586_s1 + $0x168] sm:$0xff]  ;;  %v35_v48 = vld [vmem:[%s586_s1 + $0xb0] sm:$0xff]  ;;  %v44_v51 = vld [vmem:[%s586_s1 + $0xf8] sm:$0xff] }
   0xd   :  { %v295_v52 = vpack.c.bf16 %v58_v43, %v54_v42  ;;  %v53_v53 = vld [vmem:[%s586_s1 + $0x140] sm:$0xff]  ;;  %v62_v55 = vld [vmem:[%s586_s1 + $0x188] sm:$0xff]  ;;  %v317_v57 = vpack.c.bf16 %v35_v48, %v31_v47  ;;  %316 = vmatprep.subr.bf16.mxu1 %v315_v46  ;;  %v319_v58 = vpack.c.bf16 %v44_v51, %v40_v50  ;;  %v39_v59 = vld [vmem:[%s586_s1 + $0xd0] sm:$0xff] }
   0xe   :  { %286 = vmatpush1.bf16.msra.mxu0 %v285_v20  ;;  %v57_v54 = vld [vmem:[%s586_s1 + $0x160] sm:$0xff]  ;;  %v66_v56 = vld [vmem:[%s586_s1 + $0x1a8] sm:$0xff]  ;;  %v43_v60 = vld [vmem:[%s586_s1 + $0xf0] sm:$0xff] }
   0xf   :  { %288 = vmatprep.subr.bf16.mxu0 %v287_v22  ;;  %v297_v61 = vpack.c.bf16 %v57_v54, %v53_v53  ;;  %v48_v62 = vld [vmem:[%s586_s1 + $0x118] sm:$0xff]  ;;  %v299_v0 = vpack.c.bf16 %v66_v56, %v62_v55  ;;  %v61_v1 = vld [vmem:[%s586_s1 + $0x180] sm:$0xff]  ;;  %v70_v4 = vld [vmem:[%s586_s1 + $0x1c8] sm:$0xff]  ;;  %318 = vmatpush1.bf16.msra.mxu1 %v317_v57  ;;  %v321_v6 = vpack.c.bf16 %v43_v60, %v39_v59 }
  0x10   :  { %v52_v63 = vld [vmem:[%s586_s1 + $0x138] sm:$0xff]  ;;  %v65_v2 = vld [vmem:[%s586_s1 + $0x1a0] sm:$0xff]  ;;  %v74_v5 = vld [vmem:[%s586_s1 + $0x1e8] sm:$0xff]  ;;  %320 = vmatprep.subr.bf16.mxu1 %v319_v58 }
  0x11   :  { %v323_v7 = vpack.c.bf16 %v52_v63, %v48_v62  ;;  %v47_v8 = vld [vmem:[%s586_s1 + $0x110] sm:$0xff]  ;;  %v301_v10 = vpack.c.bf16 %v65_v2, %v61_v1  ;;  %v56_v11 = vld [vmem:[%s586_s1 + $0x158] sm:$0xff]  ;;  %v303_v13 = vpack.c.bf16 %v74_v5, %v70_v4  ;;  %v69_v14 = vld [vmem:[%s586_s1 + $0x1c0] sm:$0xff] }
  0x12   :  { %290 = vmatpush1.bf16.msra.mxu0 %v289_v32  ;;  %v51_v9 = vld [vmem:[%s586_s1 + $0x130] sm:$0xff]  ;;  %v60_v12 = vld [vmem:[%s586_s1 + $0x178] sm:$0xff]  ;;  %v73_v15 = vld [vmem:[%s586_s1 + $0x1e0] sm:$0xff] }
  0x13   :  { %292 = vmatprep.subr.bf16.mxu0 %v291_v37  ;;  %322 = vmatpush1.bf16.msra.mxu1 %v321_v6  ;;  %v325_v16 = vpack.c.bf16 %v51_v9, %v47_v8  ;;  %v327_v17 = vpack.c.bf16 %v60_v12, %v56_v11  ;;  %v55_v18 = vld [vmem:[%s586_s1 + $0x150] sm:$0xff]  ;;  %v305_v20 = vpack.c.bf16 %v73_v15, %v69_v14  ;;  %v64_v21 = vld [vmem:[%s586_s1 + $0x198] sm:$0xff]  ;;  %v11_v27 = vld [vmem:[%s587_s0] sm:$0xff] }
  0x14   :  { %324 = vmatprep.subr.bf16.mxu1 %v323_v7  ;;  %v59_v19 = vld [vmem:[%s586_s1 + $0x170] sm:$0xff]  ;;  %v68_v22 = vld [vmem:[%s586_s1 + $0x1b8] sm:$0xff]  ;;  %v12_v34 = vld [vmem:[%s587_s0 + $0x8] sm:$0xff] }
  0x15   :  { %v329_v23 = vpack.c.bf16 %v59_v19, %v55_v18  ;;  %v331_v24 = vpack.c.bf16 %v68_v22, %v64_v21  ;;  %v63_v25 = vld [vmem:[%s586_s1 + $0x190] sm:$0xff]  ;;  %v72_v28 = vld [vmem:[%s586_s1 + $0x1d8] sm:$0xff] }
  0x16   :  { %294 = vmatpush1.bf16.msra.mxu0 %v293_v49  ;;  %v67_v26 = vld [vmem:[%s586_s1 + $0x1b0] sm:$0xff]  ;;  %v76_v29 = vld [vmem:[%s586_s1 + $0x1f8] sm:$0xff] }
  0x17   :  { %296 = vmatprep.subr.bf16.mxu0 %v295_v52  ;;  %326 = vmatpush1.bf16.msra.mxu1 %v325_v16  ;;  %v333_v30 = vpack.c.bf16 %v67_v26, %v63_v25  ;;  %v335_v31 = vpack.c.bf16 %v76_v29, %v72_v28  ;;  %v71_v32 = vld [vmem:[%s586_s1 + $0x1d0] sm:$0xff] }
  0x18   :  { %328 = vmatprep.subr.bf16.mxu1 %v327_v17  ;;  %v75_v33 = vld [vmem:[%s586_s1 + $0x1f0] sm:$0xff] }
  0x19   :  { %v337_v35 = vpack.c.bf16 %v75_v33, %v71_v32 }
  0x1a   :  { %298 = vmatpush1.bf16.msra.mxu0 %v297_v61 }
  0x1b   :  { %300 = vmatprep.subr.bf16.mxu0 %v299_v0  ;;  %330 = vmatpush1.bf16.msra.mxu1 %v329_v23 }
  0x1c   :  { %332 = vmatprep.subr.bf16.mxu1 %v331_v24 }
  0x1e   :  { %302 = vmatpush1.bf16.msra.mxu0 %v301_v10 }
  0x1f   :  { %304 = vmatprep.subr.bf16.mxu0 %v303_v13  ;;  %334 = vmatpush1.bf16.msra.mxu1 %v333_v30 }
  0x20   :  { %336 = vmatprep.subr.bf16.mxu1 %v335_v31 }
  0x22   :  { %306 = vmatpush1.bf16.msra.mxu0 %v305_v20 }
  0x23   :  { %338 = vmatpush1.bf16.msra.mxu1 %v337_v35 }
  0x25   :  { %142 = vmatmul.mubr.f32.vlgmr.msra.gmra.mrb[0].mxu0 %v11_v27 }
  0x26   :  { %147 = vmatprep.mubr.f32.mxu0 %v356_v3  ;;  %219 = vmatmul.mubr.f32.vlgmr.msra.gmra.mrb[0].mxu1 %v11_v27 }
  0x27   :  { %224 = vmatprep.mubr.f32.mxu1 %v356_v3 }
  0x29   :  { %148 = vmatmul.mubr.f32.gmra.mrb[2].mxu0 %v12_v34 }
  0x2a   :  { %225 = vmatmul.mubr.f32.gmra.mrb[2].mxu1 %v12_v34 }
  0xf8   :  { %v143_v36 = vpop.f32.mrb[0].mxu0 }
  0xf9   :  { %v271_v37 = vmul.f32 -1.442695, %v143_v36  ;;  %v145_v38 = vpop.f32.mrb[1].mxu0  ;;  %v220_v44 = vpop.f32.mrb[0].mxu1 }
  0xfa   :  { %v272_v39 = vmul.f32 -1.442695, %v145_v38  ;;  %v222_v45 = vpop.f32.mrb[1].mxu1 }
  0xfb   :  { %340 = vpow2.f32 %v271_v37 }
  0xfc   :  { %342 = vpow2.f32 %v272_v39  ;;  %v149_v40 = vpop.f32.mrb[2].mxu0 }
  0xfd   :  { %v273_v41 = vmul.f32 -1.442695, %v149_v40  ;;  %v151_v42 = vpop.f32.mrb[3].mxu0  ;;  %v226_v49 = vpop.f32.mrb[2].mxu1 }
  0xfe   :  { %v274_v43 = vmul.f32 -1.442695, %v151_v42  ;;  %v228_v50 = vpop.f32.mrb[3].mxu1 }
  0xff   :  { %344 = vpow2.f32 %v273_v41 }
 0x100   :  { %346 = vpow2.f32 %v274_v43 }
 0x105   :  { %v341_v46 = vpop.eup %340 }
 0x106   :  { %v343_v47 = vpop.eup %342  ;;  %v243_v48 = vadd.f32 1.0, %v341_v46 }
 0x107   :  { %v244_v3 = vadd.f32 1.0, %v343_v47 }
 0x108   :  { %348 = vrcp.f32 %v243_v48 }
 0x109   :  { %v345_v51 = vpop.eup %344  ;;  %350 = vrcp.f32 %v244_v3 }
 0x10a   :  { %v347_v52 = vpop.eup %346  ;;  %v245_v53 = vadd.f32 1.0, %v345_v51 }
 0x10b   :  { %v246_v54 = vadd.f32 1.0, %v347_v52 }
 0x10c   :  { %352 = vrcp.f32 %v245_v53 }
 0x10d   :  { %354 = vrcp.f32 %v246_v54 }
 0x112   :  { %v349_v55 = vpop.eup %348 }
 0x113   :  { %v351_v56 = vpop.eup %350  ;;  %v255_v57 = vmul.f32 %v349_v55, %v143_v36 }
 0x114   :  { %v256_v58 = vmul.f32 %v351_v56, %v145_v38 }
 0x115   :  { %v259_v59 = vmul.f32 %v255_v57, %v220_v44 }
 0x116   :  { %v353_v60 = vpop.eup %352  ;;  %v260_v61 = vmul.f32 %v256_v58, %v222_v45 }
 0x117   :  { %v355_v62 = vpop.eup %354  ;;  %v257_v63 = vmul.f32 %v353_v60, %v149_v40  ;;  %263 = vst [vmem:[%s588_s2] sm:$0xff] %v259_v59 }
 0x118   :  { %v258_v0 = vmul.f32 %v355_v62, %v151_v42  ;;  %264 = vst [vmem:[%s588_s2 + $0x8] sm:$0xff] %v260_v61 }
 0x119   :  { %v261_v1 = vmul.f32 %v257_v63, %v226_v49 }
 0x11a   :  { %v262_v2 = vmul.f32 %v258_v0, %v228_v50 }
 0x11b   :  { %265 = vst [vmem:[%s588_s2 + $0x10] sm:$0xff] %v261_v1 }
 0x11c   :  { %266 = vst [vmem:[%s588_s2 + $0x18] sm:$0xff] %v262_v2 }

</bundles_post_ra>
